<compile_context>
chip_gen: v5e
topology: v5e:2x2
jax: 0.10.0
libtpu: 0.0.40
codegen_flags: <defaults>
</compile_context>

<pallas_src>
import jax
import jax.numpy as jnp
from jax import lax
from jax.experimental import pallas as pl
from jax.experimental.pallas import tpu as pltpu

# One full sublane group per timestep: the real batch is padded to this many rows so every
# per-step slice of the precomputed gate inputs is exactly one (8,128) f32 vreg.
_B_PAD = 8


def _lstm_base_kernel(x_ref, wih_ref, whh_ref, b_ref,
                      w1_ref, b1_ref, w2_ref, b2_ref,
                      out_ref):
    H = whh_ref.shape[0]
    B = out_ref.shape[0]
    T = x_ref.shape[0] // _B_PAD

    # ---- Hoisted input projection: ONE (T*8, I) x (I, 4H) matmul for all timesteps, kept as
    # a value (vregs).  Padded batch rows are zeros and cost nothing extra on the MXU. ----
    xg = (jnp.dot(x_ref[...], wih_ref[...],
                  preferred_element_type=jnp.float32)
          + b_ref[...])                                          # (T*8, 4H)

    whh = whh_ref[...]                                           # (H, 4H), loaded once

    # ---- Full-width activation constants (hoisted out of the time loop). ----
    # Apply sigmoid across all 4H lanes; fix the g-gate lanes with tanh(x) = 2*sigmoid(2x) - 1.
    lane = lax.broadcasted_iota(jnp.int32, (1, 4 * H), 1)
    is_g = (lane >= 2 * H) & (lane < 3 * H)
    scale = jnp.where(is_g, 2.0, 1.0).astype(jnp.float32)        # pre- and post-multiplier
    shift = jnp.where(is_g, -1.0, 0.0).astype(jnp.float32)

    # ---- Fully unrolled time recurrence with STATIC indices: each xg slice is one
    # sublane-aligned vreg; h / c live in vregs across steps. ----
    h = jnp.zeros((_B_PAD, H), jnp.float32)
    c = jnp.zeros((_B_PAD, H), jnp.float32)
    for t in range(T):
        xg_t = xg[t * _B_PAD:(t + 1) * _B_PAD, :]                # static, vreg-aligned slice
        gates = xg_t + jnp.dot(h, whh, preferred_element_type=jnp.float32)
        act = jax.nn.sigmoid(gates * scale) * scale + shift      # i,f,o: sigmoid; g: tanh
        i_g = act[:, 0 * H:1 * H]
        f_g = act[:, 1 * H:2 * H]
        g_g = act[:, 2 * H:3 * H]
        o_g = act[:, 3 * H:4 * H]
        c = f_g * c + i_g * g_g
        h = o_g * jnp.tanh(c)

    # ---- FC1 -> tanh -> FC2 epilogue (runs once); only the real batch rows are written. ----
    z1 = jnp.tanh(jnp.dot(h, w1_ref[...],
                          preferred_element_type=jnp.float32) + b1_ref[...])
    pred = jnp.dot(z1, w2_ref[...],
                   preferred_element_type=jnp.float32) + b2_ref[...]
    out_ref[...] = pred[:B].astype(out_ref.dtype)


def lstm_base_forward(x, params):
    """x: (B, T, I) float32, batch_first like PyTorch. Returns (B, 2)."""
    B, T, I = x.shape
    wih_t = params["wih_t"]       # (I, 4H)
    whh_t = params["whh_t"]       # (H, 4H)
    b = params["b"]               # (1, 4H)  (= b_ih + b_hh)
    w1_t = params["w1_t"]         # (H, 16)
    b1 = params["b1"]             # (1, 16)
    w2_t = params["w2_t"]         # (16, 2)
    b2 = params["b2"]             # (1, 2)
    H = whh_t.shape[0]

    # Time-major, pad the batch to 8 rows (one sublane group per timestep), flatten to a slab
    # so the kernel can project all steps with one matmul and slice per step vreg-aligned.
    x_tm = jnp.transpose(x, (1, 0, 2))                               # (T, B, I)
    x_pad = jnp.zeros((T, _B_PAD, I), jnp.float32).at[:, :B, :].set(x_tm)
    x_flat = x_pad.reshape(T * _B_PAD, I)                            # row = t*8 + b

    # Advisory cost estimate (this kernel is latency-bound; flops/bytes are tiny).
    flops = (2 * T * _B_PAD * I * 4 * H            # hoisted input projection
             + 2 * T * _B_PAD * H * 4 * H          # recurrent matmuls
             + 2 * _B_PAD * H * 16                 # fc1
             + 2 * _B_PAD * 16 * 2)                # fc2
    transcendentals = T * _B_PAD * (4 * H + H) + _B_PAD * 16
    bytes_accessed = 4 * int(x_flat.size + wih_t.size + whh_t.size + b.size
                             + w1_t.size + b1.size + w2_t.size + b2.size + B * 2)

    vmem = pl.BlockSpec(memory_space=pltpu.MemorySpace.VMEM)
    out = pl.pallas_call(
        _lstm_base_kernel,
        out_shape=jax.ShapeDtypeStruct((B, 2), jnp.float32),
        in_specs=[vmem] * 8,
        out_specs=vmem,
        cost_estimate=pl.CostEstimate(flops=flops,
                                      transcendentals=transcendentals,
                                      bytes_accessed=bytes_accessed),
    )(x_flat, wih_t, whh_t, b, w1_t, b1, w2_t, b2)
    return out


def init_params(key, input_size, hidden_size):
    """Deterministic synthetic parameters matching nn.LSTM / nn.Linear shapes."""
    H = hidden_size
    ks = jax.random.split(key, 8)
    scale = 1.0 / jnp.sqrt(jnp.float32(H))
    u = lambda k, shape: jax.random.uniform(k, shape, jnp.float32, -scale, scale)
    w_ih = u(ks[0], (4 * H, input_size))   # PyTorch weight_ih_l0
    w_hh = u(ks[1], (4 * H, H))            # PyTorch weight_hh_l0
    b_ih = u(ks[2], (4 * H,))
    b_hh = u(ks[3], (4 * H,))
    w1 = u(ks[4], (16, H))                 # fc1.weight
    b1 = u(ks[5], (16,))
    w2 = u(ks[6], (2, 16))                 # fc2.weight
    b2 = u(ks[7], (2,))
    return {
        "wih_t": w_ih.T,
        "whh_t": w_hh.T,
        "b": (b_ih + b_hh).reshape(1, 4 * H),
        "w1_t": w1.T,
        "b1": b1.reshape(1, 16),
        "w2_t": w2.T,
        "b2": b2.reshape(1, 2),
    }


def reference_forward(x, params):
    """Pure-JAX reference of the PyTorch forward (for a sanity check)."""
    B, T, I = x.shape
    H = params["whh_t"].shape[0]
    h0 = jnp.zeros((B, H), jnp.float32)
    c0 = jnp.zeros((B, H), jnp.float32)

    def step(carry, x_t):
        h, c = carry
        gates = x_t @ params["wih_t"] + h @ params["whh_t"] + params["b"]
        i_g = jax.nn.sigmoid(gates[:, 0 * H:1 * H])
        f_g = jax.nn.sigmoid(gates[:, 1 * H:2 * H])
        g_g = jnp.tanh(gates[:, 2 * H:3 * H])
        o_g = jax.nn.sigmoid(gates[:, 3 * H:4 * H])
        c = f_g * c + i_g * g_g
        h = o_g * jnp.tanh(c)
        return (h, c), None

    (h_last, _), _ = lax.scan(step, (h0, c0), jnp.transpose(x, (1, 0, 2)))
    z1 = jnp.tanh(h_last @ params["w1_t"] + params["b1"])
    return z1 @ params["w2_t"] + params["b2"]


if __name__ == "__main__":
    # Small shapes implied by the module: batch=2, time_step=8, input=4, hidden=32.
    B, T, I, H = 2, 8, 4, 32
    key = jax.random.PRNGKey(0)
    kx, kp = jax.random.split(key)
    x = jax.random.normal(kx, (B, T, I), jnp.float32)
    params = init_params(kp, I, H)

    out = jax.block_until_ready(lstm_base_forward(x, params))
    ref = jax.block_until_ready(reference_forward(x, params))

    assert out.shape == (B, 2), out.shape
    assert jnp.allclose(out, ref, atol=1e-4, rtol=1e-4), (out, ref)
    print("KERNEL_OK")
</pallas_src>

<mosaic_0001>
module attributes {stable_mosaic.version = 11 : i64} {
  func.func @_lstm_base_kernel(%arg0: memref<64x4xf32, #tpu.memory_space<vmem>>, %arg1: memref<4x128xf32, #tpu.memory_space<vmem>>, %arg2: memref<32x128xf32, #tpu.memory_space<vmem>>, %arg3: memref<1x128xf32, #tpu.memory_space<vmem>>, %arg4: memref<32x16xf32, #tpu.memory_space<vmem>>, %arg5: memref<1x16xf32, #tpu.memory_space<vmem>>, %arg6: memref<16x2xf32, #tpu.memory_space<vmem>>, %arg7: memref<1x2xf32, #tpu.memory_space<vmem>>, %arg8: memref<2x2xf32, #tpu.memory_space<vmem>>) attributes {dimension_semantics = [], scalar_prefetch = 0 : i64, scratch_operands = 0 : i64, tpu.core_type = #tpu.core_type<tc>} {
    %c0 = arith.constant 0 : index
    %c0_0 = arith.constant 0 : index
    %0 = vector.load %arg0[%c0, %c0_0] : memref<64x4xf32, #tpu.memory_space<vmem>>, vector<64x4xf32>
    %c0_1 = arith.constant 0 : index
    %c0_2 = arith.constant 0 : index
    %1 = vector.load %arg1[%c0_1, %c0_2] : memref<4x128xf32, #tpu.memory_space<vmem>>, vector<4x128xf32>
    %cst = arith.constant dense<0.000000e+00> : vector<64x128xf32>
    %2 = tpu.matmul %0, %1, %cst {dimension_numbers = #tpu.dot_dimension_numbers<[1], [0], [0], [1], [0, 0, 1, 1], [], []>} : vector<64x4xf32>, vector<4x128xf32>, vector<64x128xf32> -> vector<64x128xf32>
    %c0_3 = arith.constant 0 : index
    %c0_4 = arith.constant 0 : index
    %3 = vector.load %arg3[%c0_3, %c0_4] : memref<1x128xf32, #tpu.memory_space<vmem>>, vector<1x128xf32>
    %4 = vector.broadcast %3 : vector<1x128xf32> to vector<64x128xf32>
    %5 = arith.addf %2, %4 : vector<64x128xf32>
    %c0_5 = arith.constant 0 : index
    %c0_6 = arith.constant 0 : index
    %6 = vector.load %arg2[%c0_5, %c0_6] : memref<32x128xf32, #tpu.memory_space<vmem>>, vector<32x128xf32>
    %7 = tpu.iota {dimensions = array<i32: 1>} : vector<1x128xi32>
    %c64_i32 = arith.constant 64 : i32
    %8 = vector.broadcast %c64_i32 : i32 to vector<1x128xi32>
    %9 = arith.cmpi sge, %7, %8 : vector<1x128xi32>
    %c96_i32 = arith.constant 96 : i32
    %10 = vector.broadcast %c96_i32 : i32 to vector<1x128xi32>
    %11 = arith.cmpi slt, %7, %10 : vector<1x128xi32>
    %12 = arith.andi %9, %11 : vector<1x128xi1>
    %cst_7 = arith.constant 2.000000e+00 : f32
    %cst_8 = arith.constant 1.000000e+00 : f32
    %13 = vector.broadcast %cst_7 : f32 to vector<1x128xf32>
    %14 = vector.broadcast %cst_8 : f32 to vector<1x128xf32>
    %15 = arith.select %12, %13, %14 : vector<1x128xi1>, vector<1x128xf32>
    %cst_9 = arith.constant -1.000000e+00 : f32
    %cst_10 = arith.constant 0.000000e+00 : f32
    %16 = vector.broadcast %cst_9 : f32 to vector<1x128xf32>
    %17 = vector.broadcast %cst_10 : f32 to vector<1x128xf32>
    %18 = arith.select %12, %16, %17 : vector<1x128xi1>, vector<1x128xf32>
    %cst_11 = arith.constant 0.000000e+00 : f32
    %19 = vector.broadcast %cst_11 : f32 to vector<8x32xf32>
    %cst_12 = arith.constant 0.000000e+00 : f32
    %20 = vector.broadcast %cst_12 : f32 to vector<8x32xf32>
    %21 = vector.extract_strided_slice %5 {offsets = [0, 0], sizes = [8, 128], strides = [1, 1]} : vector<64x128xf32> to vector<8x128xf32>
    %cst_13 = arith.constant dense<0.000000e+00> : vector<8x128xf32>
    %22 = tpu.matmul %19, %6, %cst_13 {dimension_numbers = #tpu.dot_dimension_numbers<[1], [0], [0], [1], [0, 0, 1, 1], [], []>} : vector<8x32xf32>, vector<32x128xf32>, vector<8x128xf32> -> vector<8x128xf32>
    %23 = arith.addf %21, %22 : vector<8x128xf32>
    %24 = vector.broadcast %15 : vector<1x128xf32> to vector<8x128xf32>
    %25 = arith.mulf %23, %24 : vector<8x128xf32>
    %26 = arith.negf %25 : vector<8x128xf32>
    %27 = math.exp %26 : vector<8x128xf32>
    %cst_14 = arith.constant 1.000000e+00 : f32
    %28 = vector.broadcast %cst_14 : f32 to vector<8x128xf32>
    %29 = arith.addf %28, %27 : vector<8x128xf32>
    %30 = arith.divf %28, %29 : vector<8x128xf32>
    %31 = vector.broadcast %15 : vector<1x128xf32> to vector<8x128xf32>
    %32 = arith.mulf %30, %31 : vector<8x128xf32>
    %33 = vector.broadcast %18 : vector<1x128xf32> to vector<8x128xf32>
    %34 = arith.addf %32, %33 : vector<8x128xf32>
    %35 = vector.extract_strided_slice %34 {offsets = [0, 0], sizes = [8, 32], strides = [1, 1]} : vector<8x128xf32> to vector<8x32xf32>
    %36 = vector.extract_strided_slice %34 {offsets = [0, 32], sizes = [8, 32], strides = [1, 1]} : vector<8x128xf32> to vector<8x32xf32>
    %37 = vector.extract_strided_slice %34 {offsets = [0, 64], sizes = [8, 32], strides = [1, 1]} : vector<8x128xf32> to vector<8x32xf32>
    %38 = vector.extract_strided_slice %34 {offsets = [0, 96], sizes = [8, 32], strides = [1, 1]} : vector<8x128xf32> to vector<8x32xf32>
    %39 = arith.mulf %36, %20 : vector<8x32xf32>
    %40 = arith.mulf %35, %37 : vector<8x32xf32>
    %41 = arith.addf %39, %40 : vector<8x32xf32>
    %42 = math.tanh %41 : vector<8x32xf32>
    %43 = arith.mulf %38, %42 : vector<8x32xf32>
    %44 = vector.extract_strided_slice %5 {offsets = [8, 0], sizes = [8, 128], strides = [1, 1]} : vector<64x128xf32> to vector<8x128xf32>
    %cst_15 = arith.constant dense<0.000000e+00> : vector<8x128xf32>
    %45 = tpu.matmul %43, %6, %cst_15 {dimension_numbers = #tpu.dot_dimension_numbers<[1], [0], [0], [1], [0, 0, 1, 1], [], []>} : vector<8x32xf32>, vector<32x128xf32>, vector<8x128xf32> -> vector<8x128xf32>
    %46 = arith.addf %44, %45 : vector<8x128xf32>
    %47 = vector.broadcast %15 : vector<1x128xf32> to vector<8x128xf32>
    %48 = arith.mulf %46, %47 : vector<8x128xf32>
    %49 = arith.negf %48 : vector<8x128xf32>
    %50 = math.exp %49 : vector<8x128xf32>
    %cst_16 = arith.constant 1.000000e+00 : f32
    %51 = vector.broadcast %cst_16 : f32 to vector<8x128xf32>
    %52 = arith.addf %51, %50 : vector<8x128xf32>
    %53 = arith.divf %51, %52 : vector<8x128xf32>
    %54 = vector.broadcast %15 : vector<1x128xf32> to vector<8x128xf32>
    %55 = arith.mulf %53, %54 : vector<8x128xf32>
    %56 = vector.broadcast %18 : vector<1x128xf32> to vector<8x128xf32>
    %57 = arith.addf %55, %56 : vector<8x128xf32>
    %58 = vector.extract_strided_slice %57 {offsets = [0, 0], sizes = [8, 32], strides = [1, 1]} : vector<8x128xf32> to vector<8x32xf32>
    %59 = vector.extract_strided_slice %57 {offsets = [0, 32], sizes = [8, 32], strides = [1, 1]} : vector<8x128xf32> to vector<8x32xf32>
    %60 = vector.extract_strided_slice %57 {offsets = [0, 64], sizes = [8, 32], strides = [1, 1]} : vector<8x128xf32> to vector<8x32xf32>
    %61 = vector.extract_strided_slice %57 {offsets = [0, 96], sizes = [8, 32], strides = [1, 1]} : vector<8x128xf32> to vector<8x32xf32>
    %62 = arith.mulf %59, %41 : vector<8x32xf32>
    %63 = arith.mulf %58, %60 : vector<8x32xf32>
    %64 = arith.addf %62, %63 : vector<8x32xf32>
    %65 = math.tanh %64 : vector<8x32xf32>
    %66 = arith.mulf %61, %65 : vector<8x32xf32>
    %67 = vector.extract_strided_slice %5 {offsets = [16, 0], sizes = [8, 128], strides = [1, 1]} : vector<64x128xf32> to vector<8x128xf32>
    %cst_17 = arith.constant dense<0.000000e+00> : vector<8x128xf32>
    %68 = tpu.matmul %66, %6, %cst_17 {dimension_numbers = #tpu.dot_dimension_numbers<[1], [0], [0], [1], [0, 0, 1, 1], [], []>} : vector<8x32xf32>, vector<32x128xf32>, vector<8x128xf32> -> vector<8x128xf32>
    %69 = arith.addf %67, %68 : vector<8x128xf32>
    %70 = vector.broadcast %15 : vector<1x128xf32> to vector<8x128xf32>
    %71 = arith.mulf %69, %70 : vector<8x128xf32>
    %72 = arith.negf %71 : vector<8x128xf32>
    %73 = math.exp %72 : vector<8x128xf32>
    %cst_18 = arith.constant 1.000000e+00 : f32
    %74 = vector.broadcast %cst_18 : f32 to vector<8x128xf32>
    %75 = arith.addf %74, %73 : vector<8x128xf32>
    %76 = arith.divf %74, %75 : vector<8x128xf32>
    %77 = vector.broadcast %15 : vector<1x128xf32> to vector<8x128xf32>
    %78 = arith.mulf %76, %77 : vector<8x128xf32>
    %79 = vector.broadcast %18 : vector<1x128xf32> to vector<8x128xf32>
    %80 = arith.addf %78, %79 : vector<8x128xf32>
    %81 = vector.extract_strided_slice %80 {offsets = [0, 0], sizes = [8, 32], strides = [1, 1]} : vector<8x128xf32> to vector<8x32xf32>
    %82 = vector.extract_strided_slice %80 {offsets = [0, 32], sizes = [8, 32], strides = [1, 1]} : vector<8x128xf32> to vector<8x32xf32>
    %83 = vector.extract_strided_slice %80 {offsets = [0, 64], sizes = [8, 32], strides = [1, 1]} : vector<8x128xf32> to vector<8x32xf32>
    %84 = vector.extract_strided_slice %80 {offsets = [0, 96], sizes = [8, 32], strides = [1, 1]} : vector<8x128xf32> to vector<8x32xf32>
    %85 = arith.mulf %82, %64 : vector<8x32xf32>
    %86 = arith.mulf %81, %83 : vector<8x32xf32>
    %87 = arith.addf %85, %86 : vector<8x32xf32>
    %88 = math.tanh %87 : vector<8x32xf32>
    %89 = arith.mulf %84, %88 : vector<8x32xf32>
    %90 = vector.extract_strided_slice %5 {offsets = [24, 0], sizes = [8, 128], strides = [1, 1]} : vector<64x128xf32> to vector<8x128xf32>
    %cst_19 = arith.constant dense<0.000000e+00> : vector<8x128xf32>
    %91 = tpu.matmul %89, %6, %cst_19 {dimension_numbers = #tpu.dot_dimension_numbers<[1], [0], [0], [1], [0, 0, 1, 1], [], []>} : vector<8x32xf32>, vector<32x128xf32>, vector<8x128xf32> -> vector<8x128xf32>
    %92 = arith.addf %90, %91 : vector<8x128xf32>
    %93 = vector.broadcast %15 : vector<1x128xf32> to vector<8x128xf32>
    %94 = arith.mulf %92, %93 : vector<8x128xf32>
    %95 = arith.negf %94 : vector<8x128xf32>
    %96 = math.exp %95 : vector<8x128xf32>
    %cst_20 = arith.constant 1.000000e+00 : f32
    %97 = vector.broadcast %cst_20 : f32 to vector<8x128xf32>
    %98 = arith.addf %97, %96 : vector<8x128xf32>
    %99 = arith.divf %97, %98 : vector<8x128xf32>
    %100 = vector.broadcast %15 : vector<1x128xf32> to vector<8x128xf32>
    %101 = arith.mulf %99, %100 : vector<8x128xf32>
    %102 = vector.broadcast %18 : vector<1x128xf32> to vector<8x128xf32>
    %103 = arith.addf %101, %102 : vector<8x128xf32>
    %104 = vector.extract_strided_slice %103 {offsets = [0, 0], sizes = [8, 32], strides = [1, 1]} : vector<8x128xf32> to vector<8x32xf32>
    %105 = vector.extract_strided_slice %103 {offsets = [0, 32], sizes = [8, 32], strides = [1, 1]} : vector<8x128xf32> to vector<8x32xf32>
    %106 = vector.extract_strided_slice %103 {offsets = [0, 64], sizes = [8, 32], strides = [1, 1]} : vector<8x128xf32> to vector<8x32xf32>
    %107 = vector.extract_strided_slice %103 {offsets = [0, 96], sizes = [8, 32], strides = [1, 1]} : vector<8x128xf32> to vector<8x32xf32>
    %108 = arith.mulf %105, %87 : vector<8x32xf32>
    %109 = arith.mulf %104, %106 : vector<8x32xf32>
    %110 = arith.addf %108, %109 : vector<8x32xf32>
    %111 = math.tanh %110 : vector<8x32xf32>
    %112 = arith.mulf %107, %111 : vector<8x32xf32>
    %113 = vector.extract_strided_slice %5 {offsets = [32, 0], sizes = [8, 128], strides = [1, 1]} : vector<64x128xf32> to vector<8x128xf32>
    %cst_21 = arith.constant dense<0.000000e+00> : vector<8x128xf32>
    %114 = tpu.matmul %112, %6, %cst_21 {dimension_numbers = #tpu.dot_dimension_numbers<[1], [0], [0], [1], [0, 0, 1, 1], [], []>} : vector<8x32xf32>, vector<32x128xf32>, vector<8x128xf32> -> vector<8x128xf32>
    %115 = arith.addf %113, %114 : vector<8x128xf32>
    %116 = vector.broadcast %15 : vector<1x128xf32> to vector<8x128xf32>
    %117 = arith.mulf %115, %116 : vector<8x128xf32>
    %118 = arith.negf %117 : vector<8x128xf32>
    %119 = math.exp %118 : vector<8x128xf32>
    %cst_22 = arith.constant 1.000000e+00 : f32
    %120 = vector.broadcast %cst_22 : f32 to vector<8x128xf32>
    %121 = arith.addf %120, %119 : vector<8x128xf32>
    %122 = arith.divf %120, %121 : vector<8x128xf32>
    %123 = vector.broadcast %15 : vector<1x128xf32> to vector<8x128xf32>
    %124 = arith.mulf %122, %123 : vector<8x128xf32>
    %125 = vector.broadcast %18 : vector<1x128xf32> to vector<8x128xf32>
    %126 = arith.addf %124, %125 : vector<8x128xf32>
    %127 = vector.extract_strided_slice %126 {offsets = [0, 0], sizes = [8, 32], strides = [1, 1]} : vector<8x128xf32> to vector<8x32xf32>
    %128 = vector.extract_strided_slice %126 {offsets = [0, 32], sizes = [8, 32], strides = [1, 1]} : vector<8x128xf32> to vector<8x32xf32>
    %129 = vector.extract_strided_slice %126 {offsets = [0, 64], sizes = [8, 32], strides = [1, 1]} : vector<8x128xf32> to vector<8x32xf32>
    %130 = vector.extract_strided_slice %126 {offsets = [0, 96], sizes = [8, 32], strides = [1, 1]} : vector<8x128xf32> to vector<8x32xf32>
    %131 = arith.mulf %128, %110 : vector<8x32xf32>
    %132 = arith.mulf %127, %129 : vector<8x32xf32>
    %133 = arith.addf %131, %132 : vector<8x32xf32>
    %134 = math.tanh %133 : vector<8x32xf32>
    %135 = arith.mulf %130, %134 : vector<8x32xf32>
    %136 = vector.extract_strided_slice %5 {offsets = [40, 0], sizes = [8, 128], strides = [1, 1]} : vector<64x128xf32> to vector<8x128xf32>
    %cst_23 = arith.constant dense<0.000000e+00> : vector<8x128xf32>
    %137 = tpu.matmul %135, %6, %cst_23 {dimension_numbers = #tpu.dot_dimension_numbers<[1], [0], [0], [1], [0, 0, 1, 1], [], []>} : vector<8x32xf32>, vector<32x128xf32>, vector<8x128xf32> -> vector<8x128xf32>
    %138 = arith.addf %136, %137 : vector<8x128xf32>
    %139 = vector.broadcast %15 : vector<1x128xf32> to vector<8x128xf32>
    %140 = arith.mulf %138, %139 : vector<8x128xf32>
    %141 = arith.negf %140 : vector<8x128xf32>
    %142 = math.exp %141 : vector<8x128xf32>
    %cst_24 = arith.constant 1.000000e+00 : f32
    %143 = vector.broadcast %cst_24 : f32 to vector<8x128xf32>
    %144 = arith.addf %143, %142 : vector<8x128xf32>
    %145 = arith.divf %143, %144 : vector<8x128xf32>
    %146 = vector.broadcast %15 : vector<1x128xf32> to vector<8x128xf32>
    %147 = arith.mulf %145, %146 : vector<8x128xf32>
    %148 = vector.broadcast %18 : vector<1x128xf32> to vector<8x128xf32>
    %149 = arith.addf %147, %148 : vector<8x128xf32>
    %150 = vector.extract_strided_slice %149 {offsets = [0, 0], sizes = [8, 32], strides = [1, 1]} : vector<8x128xf32> to vector<8x32xf32>
    %151 = vector.extract_strided_slice %149 {offsets = [0, 32], sizes = [8, 32], strides = [1, 1]} : vector<8x128xf32> to vector<8x32xf32>
    %152 = vector.extract_strided_slice %149 {offsets = [0, 64], sizes = [8, 32], strides = [1, 1]} : vector<8x128xf32> to vector<8x32xf32>
    %153 = vector.extract_strided_slice %149 {offsets = [0, 96], sizes = [8, 32], strides = [1, 1]} : vector<8x128xf32> to vector<8x32xf32>
    %154 = arith.mulf %151, %133 : vector<8x32xf32>
    %155 = arith.mulf %150, %152 : vector<8x32xf32>
    %156 = arith.addf %154, %155 : vector<8x32xf32>
    %157 = math.tanh %156 : vector<8x32xf32>
    %158 = arith.mulf %153, %157 : vector<8x32xf32>
    %159 = vector.extract_strided_slice %5 {offsets = [48, 0], sizes = [8, 128], strides = [1, 1]} : vector<64x128xf32> to vector<8x128xf32>
    %cst_25 = arith.constant dense<0.000000e+00> : vector<8x128xf32>
    %160 = tpu.matmul %158, %6, %cst_25 {dimension_numbers = #tpu.dot_dimension_numbers<[1], [0], [0], [1], [0, 0, 1, 1], [], []>} : vector<8x32xf32>, vector<32x128xf32>, vector<8x128xf32> -> vector<8x128xf32>
    %161 = arith.addf %159, %160 : vector<8x128xf32>
    %162 = vector.broadcast %15 : vector<1x128xf32> to vector<8x128xf32>
    %163 = arith.mulf %161, %162 : vector<8x128xf32>
    %164 = arith.negf %163 : vector<8x128xf32>
    %165 = math.exp %164 : vector<8x128xf32>
    %cst_26 = arith.constant 1.000000e+00 : f32
    %166 = vector.broadcast %cst_26 : f32 to vector<8x128xf32>
    %167 = arith.addf %166, %165 : vector<8x128xf32>
    %168 = arith.divf %166, %167 : vector<8x128xf32>
    %169 = vector.broadcast %15 : vector<1x128xf32> to vector<8x128xf32>
    %170 = arith.mulf %168, %169 : vector<8x128xf32>
    %171 = vector.broadcast %18 : vector<1x128xf32> to vector<8x128xf32>
    %172 = arith.addf %170, %171 : vector<8x128xf32>
    %173 = vector.extract_strided_slice %172 {offsets = [0, 0], sizes = [8, 32], strides = [1, 1]} : vector<8x128xf32> to vector<8x32xf32>
    %174 = vector.extract_strided_slice %172 {offsets = [0, 32], sizes = [8, 32], strides = [1, 1]} : vector<8x128xf32> to vector<8x32xf32>
    %175 = vector.extract_strided_slice %172 {offsets = [0, 64], sizes = [8, 32], strides = [1, 1]} : vector<8x128xf32> to vector<8x32xf32>
    %176 = vector.extract_strided_slice %172 {offsets = [0, 96], sizes = [8, 32], strides = [1, 1]} : vector<8x128xf32> to vector<8x32xf32>
    %177 = arith.mulf %174, %156 : vector<8x32xf32>
    %178 = arith.mulf %173, %175 : vector<8x32xf32>
    %179 = arith.addf %177, %178 : vector<8x32xf32>
    %180 = math.tanh %179 : vector<8x32xf32>
    %181 = arith.mulf %176, %180 : vector<8x32xf32>
    %182 = vector.extract_strided_slice %5 {offsets = [56, 0], sizes = [8, 128], strides = [1, 1]} : vector<64x128xf32> to vector<8x128xf32>
    %cst_27 = arith.constant dense<0.000000e+00> : vector<8x128xf32>
    %183 = tpu.matmul %181, %6, %cst_27 {dimension_numbers = #tpu.dot_dimension_numbers<[1], [0], [0], [1], [0, 0, 1, 1], [], []>} : vector<8x32xf32>, vector<32x128xf32>, vector<8x128xf32> -> vector<8x128xf32>
    %184 = arith.addf %182, %183 : vector<8x128xf32>
    %185 = vector.broadcast %15 : vector<1x128xf32> to vector<8x128xf32>
    %186 = arith.mulf %184, %185 : vector<8x128xf32>
    %187 = arith.negf %186 : vector<8x128xf32>
    %188 = math.exp %187 : vector<8x128xf32>
    %cst_28 = arith.constant 1.000000e+00 : f32
    %189 = vector.broadcast %cst_28 : f32 to vector<8x128xf32>
    %190 = arith.addf %189, %188 : vector<8x128xf32>
    %191 = arith.divf %189, %190 : vector<8x128xf32>
    %192 = vector.broadcast %15 : vector<1x128xf32> to vector<8x128xf32>
    %193 = arith.mulf %191, %192 : vector<8x128xf32>
    %194 = vector.broadcast %18 : vector<1x128xf32> to vector<8x128xf32>
    %195 = arith.addf %193, %194 : vector<8x128xf32>
    %196 = vector.extract_strided_slice %195 {offsets = [0, 0], sizes = [8, 32], strides = [1, 1]} : vector<8x128xf32> to vector<8x32xf32>
    %197 = vector.extract_strided_slice %195 {offsets = [0, 32], sizes = [8, 32], strides = [1, 1]} : vector<8x128xf32> to vector<8x32xf32>
    %198 = vector.extract_strided_slice %195 {offsets = [0, 64], sizes = [8, 32], strides = [1, 1]} : vector<8x128xf32> to vector<8x32xf32>
    %199 = vector.extract_strided_slice %195 {offsets = [0, 96], sizes = [8, 32], strides = [1, 1]} : vector<8x128xf32> to vector<8x32xf32>
    %200 = arith.mulf %197, %179 : vector<8x32xf32>
    %201 = arith.mulf %196, %198 : vector<8x32xf32>
    %202 = arith.addf %200, %201 : vector<8x32xf32>
    %203 = math.tanh %202 : vector<8x32xf32>
    %204 = arith.mulf %199, %203 : vector<8x32xf32>
    %c0_29 = arith.constant 0 : index
    %c0_30 = arith.constant 0 : index
    %205 = vector.load %arg4[%c0_29, %c0_30] : memref<32x16xf32, #tpu.memory_space<vmem>>, vector<32x16xf32>
    %cst_31 = arith.constant dense<0.000000e+00> : vector<8x16xf32>
    %206 = tpu.matmul %204, %205, %cst_31 {dimension_numbers = #tpu.dot_dimension_numbers<[1], [0], [0], [1], [0, 0, 1, 1], [], []>} : vector<8x32xf32>, vector<32x16xf32>, vector<8x16xf32> -> vector<8x16xf32>
    %c0_32 = arith.constant 0 : index
    %c0_33 = arith.constant 0 : index
    %207 = vector.load %arg5[%c0_32, %c0_33] : memref<1x16xf32, #tpu.memory_space<vmem>>, vector<1x16xf32>
    %208 = vector.broadcast %207 : vector<1x16xf32> to vector<8x16xf32>
    %209 = arith.addf %206, %208 : vector<8x16xf32>
    %210 = math.tanh %209 : vector<8x16xf32>
    %c0_34 = arith.constant 0 : index
    %c0_35 = arith.constant 0 : index
    %211 = vector.load %arg6[%c0_34, %c0_35] : memref<16x2xf32, #tpu.memory_space<vmem>>, vector<16x2xf32>
    %cst_36 = arith.constant dense<0.000000e+00> : vector<8x2xf32>
    %212 = tpu.matmul %210, %211, %cst_36 {dimension_numbers = #tpu.dot_dimension_numbers<[1], [0], [0], [1], [0, 0, 1, 1], [], []>} : vector<8x16xf32>, vector<16x2xf32>, vector<8x2xf32> -> vector<8x2xf32>
    %c0_37 = arith.constant 0 : index
    %c0_38 = arith.constant 0 : index
    %213 = vector.load %arg7[%c0_37, %c0_38] : memref<1x2xf32, #tpu.memory_space<vmem>>, vector<1x2xf32>
    %214 = vector.broadcast %213 : vector<1x2xf32> to vector<8x2xf32>
    %215 = arith.addf %212, %214 : vector<8x2xf32>
    %216 = vector.extract_strided_slice %215 {offsets = [0, 0], sizes = [2, 2], strides = [1, 1]} : vector<8x2xf32> to vector<2x2xf32>
    %c0_39 = arith.constant 0 : index
    %c0_40 = arith.constant 0 : index
    %217 = vector.load %arg8[%c0_39, %c0_40] : memref<2x2xf32, #tpu.memory_space<vmem>>, vector<2x2xf32>
    tpu.vector_store %arg8[%c0_39, %c0_40], %216 {strides = array<i32>} : memref<2x2xf32, #tpu.memory_space<vmem>>, vector<2x2xf32>,
    return
  }
}

</mosaic_0001>

<bundles_post_ra>
// kernel: tpu_custom_call.1
= control target key start
LH: loop header
LB: loop body
LE: loop exit
PB: predicated region body
PF: predicated region fallthrough
CT: control target
= control target key end

     0   :  { %vm68_vm0 = vcmask 1043456   ;;  %vm43_vm1 = vcmask 31744   ;;  %s1099_s0 = inlined_call_operand.vmem [shape: f32[64,4], index: 0, kind: input, shape index: {}]   ;;  %s1100_s1 = inlined_call_operand.vmem [shape: f32[4,128], index: 1, kind: input, shape index: {}]   ;;  %s1101_s2 = inlined_call_operand.vmem [shape: f32[32,128], index: 2, kind: input, shape index: {}]   ;;  %s1102_s3 = inlined_call_operand.vmem [shape: f32[1,128], index: 3, kind: input, shape index: {}]   ;;  %s1103_s4 = inlined_call_operand.vmem [shape: f32[32,16], index: 4, kind: input, shape index: {}]   ;;  %s1104_s5 = inlined_call_operand.vmem [shape: f32[1,16], index: 5, kind: input, shape index: {}]   ;;  %s1105_s6 = inlined_call_operand.vmem [shape: f32[16,2], index: 6, kind: input, shape index: {}]   ;;  %s1106_s7 = inlined_call_operand.vmem [shape: f32[1,2], index: 7, kind: input, shape index: {}]   ;;  %s1107_s8 = inlined_call_operand.hbm [shape: f32[2,2], index: 8, kind: output, shape index: {}]  }
   0x1   :  { %v890_v0 = vld [vmem:[%s1101_s2 + $0x18] sm:$0xff]  ;;  %v895_v1 = vld [vmem:[%s1101_s2 + $0x10] sm:$0xff]  ;;  %v38_v2 = vld [vmem:[%s1100_s1] sm:$0xf] }
   0x2   :  { %140 = vmatpush.msra.mxu1 %v890_v0  ;;  %725 = vmatpush.msk.msra.mxu0 %vm68_vm0, %v38_v2  ;;  %v30_v3 = vld [vmem:[%s1099_s0] sm:$0xff]  ;;  %v907_v4 = vld [vmem:[%s1101_s2 + $0x8] sm:$0xff] }
   0x3   :  { %726 = vmatmul.msk.f32.vlgmr.msra.gmra.mxu0 %vm43_vm1, %v30_v3  ;;  %751 = vmatpush.msk.msra.mxu2 %vm68_vm0, %v38_v2 }
   0x4   :  { %141 = vmatpush.msra.mxu1 %v895_v1 }
   0x5   :  { %205 = vmatpush.msrb.mxu2 %v890_v0 }
   0x6   :  { %13 = vsyncpa [#allocation3], 0  ;;  %v915_v5 = vld [vmem:[%s1101_s2] sm:$0xff]  ;;  %752 = vmatpush.msk.msra.mxu3 %vm68_vm0, %v38_v2  ;;  %142 = vmatpush.msra.mxu1 %v907_v4  ;;  %v837_v6 = vmov 0.0   ;;  %v117_v7 = vlaneseq  ;;  %v838_v13 = vmov 1.0   ;;  %s840_s17 = smov 32  }
   0x7   :  { %206 = vmatpush.msrb.mxu2 %v895_v1  ;;  %v937_v9 = vld [vmem:[%s1102_s3] ss:$0 sm:$0xff]  ;;  %s839_s3 = smov 64   ;;  %v35_v40 = vld [vmem:[%s1099_s0 + $0x28] sm:$0xff]  ;;  %vm124_vm9 = vcmask 261120   ;;  %s841_s21 = smov [#allocation2]  }
   0x8   :  { %270 = vmatpush.msrb.mxu3 %v890_v0  ;;  %143 = vmatpush.msra.mxu1 %v915_v5  ;;  %v118_v8 = vand.u32 127, %v117_v7  ;;  %v31_v43 = vld [vmem:[%s1099_s0 + $0x8] sm:$0xff]  ;;  %s714_s22 = sshll.u32 %s841_s21, 4  ;;  %s716_s24 = sshll.u32 %s1107_s8, 4  ;;  %s715_s22 = int_to_ptr.vmem [resolvable:$true] %s714_s22  ;;  %s717_s24 = int_to_ptr.hbm [resolvable:$true] %s716_s24 }
   0x9   :  { %207 = vmatpush.msrb.mxu2 %v907_v4  ;;  %144 = vmatmul.f32.vlgmr.msra.gmra.mxu1 %v837_v6 }
   0xa   :  { %271 = vmatpush.msrb.mxu3 %v895_v1  ;;  %335 = vmatpush.msrb.mxu1 %v890_v0  ;;  %vm119_vm2 = vcmp.ge.s32.totalorder %v118_v8, 64  ;;  %vm120_vm3 = vcmp.lt.s32.totalorder %v118_v8, 96 }
   0xb   :  { %208 = vmatpush.msrb.mxu2 %v915_v5  ;;  %vm939_vm4 = vmand %vm119_vm2, %vm120_vm3  ;;  %727 = vmatmul.msk.f32.gmra.mxu0 %vm43_vm1, %v31_v43 }
   0xc   :  { %272 = vmatpush.msrb.mxu3 %v907_v4  ;;  %336 = vmatpush.msrb.mxu1 %v895_v1  ;;  %v946_v14 = vsel %vm939_vm4, 2.0, %v838_v13  ;;  %v951_v30 = vsel %vm939_vm4, -1.0, %v837_v6  ;;  %v36_v13 = vld [vmem:[%s1099_s0 + $0x30] sm:$0xff] }
   0xd   :  { %731 = vmatmul.msk.f32.vlgmr.msra.gmra.mxu2 %vm43_vm1, %v35_v40  ;;  %732 = vmatmul.msk.f32.vlgmr.msra.gmra.mxu3 %vm43_vm1, %v36_v13 }
   0xe   :  { %273 = vmatpush.msrb.mxu3 %v915_v5  ;;  %337 = vmatpush.msrb.mxu1 %v907_v4 }
   0xf   :  { %400 = vmatpush.msra.mxu2 %v890_v0 }
  0x10   :  { %338 = vmatpush.msrb.mxu1 %v915_v5  ;;  %465 = vmatpush.msra.mxu3 %v890_v0 }
  0x11   :  { %401 = vmatpush.msra.mxu2 %v895_v1 }
  0x12   :  { %530 = vmatpush.msra.mxu1 %v890_v0  ;;  %466 = vmatpush.msra.mxu3 %v895_v1 }
  0x13   :  { %402 = vmatpush.msra.mxu2 %v907_v4 }
  0x14   :  { %531 = vmatpush.msra.mxu1 %v895_v1  ;;  %467 = vmatpush.msra.mxu3 %v907_v4 }
  0x15   :  { %403 = vmatpush.msra.mxu2 %v915_v5 }
  0x16   :  { %532 = vmatpush.msra.mxu1 %v907_v4  ;;  %468 = vmatpush.msra.mxu3 %v915_v5 }
  0x18   :  { %533 = vmatpush.msra.mxu1 %v915_v5 }
  0x80   :  { %v89_v10 = vpop.f32.mrf.mxu0 }
  0x81   :  { %v90_v12 = vadd.f32 %v937_v9, %v89_v10 }
  0x86   :  { %v145_v15 = vpop.f32.mrf.mxu1 }
  0x87   :  { %v148_v16 = vadd.f32 %v145_v15, %v90_v12  ;;  %v37_v15 = vld [vmem:[%s1099_s0 + $0x38] sm:$0xff] }
  0x88   :  { %v92_v46 = vpop.f32.mrf.mxu0  ;;  %733 = vmatmul.msk.f32.gmra.mxu3 %vm43_vm1, %v37_v15 }
  0x89   :  { %v149_v17 = vmul.f32 %v148_v16, %v946_v14  ;;  %v93_v47 = vadd.f32 %v937_v9, %v92_v46  ;;  %v33_v46 = vld [vmem:[%s1099_s0 + $0x18] sm:$0xff] }
  0x8b   :  { %v734_v18 = vmul.f32 -1.442695, %v149_v17 }
  0x8d   :  { %761 = vpow2.f32 %v734_v18 }
  0x90   :  { %v976_v45 = vpop.f32.mrf.mxu2  ;;  %v1003_v18 = vpop.f32.mrf.mxu3 }
  0x93   :  { %v762_v19 = vpop.eup %761 }
  0x94   :  { %v153_v20 = vadd.f32 1.0, %v762_v19 }
  0x96   :  { %763 = vrcp.f32 %v153_v20  ;;  %v165_v24 = vand.u32 2147483648, %v153_v20  ;;  %v163_v26 = vand.u32 2147483647, %v153_v20  ;;  %vm159_vm6 = vweird.f32 %v153_v20 }
  0x98   :  { %v166_v28 = vor.u32 1.1754944e-38, %v165_v24  ;;  %vm164_vm8 = vcmp.eq.f32.partialorder %v163_v26, 8.507059e+37 }
  0x9c   :  { %v764_v21 = vpop.eup %763 }
  0x9d   :  { %v155_v22 = vmul.f32 %v764_v21, %v153_v20  ;;  %vm160_vm5 = vweird.f32 %v764_v21 }
  0x9e   :  { %vm161_vm7 = vmor %vm159_vm6, %vm160_vm5 }
  0x9f   :  { %v156_v23 = vsub.f32 1.0, %v155_v22 }
  0xa1   :  { %v157_v25 = vmul.f32 %v764_v21, %v156_v23 }
  0xa3   :  { %v158_v27 = vadd.f32 %v764_v21, %v157_v25 }
  0xa5   :  { %v162_v29 = vsel %vm161_vm7, %v764_v21, %v158_v27 }
  0xa6   :  { %v167_v31 = vsel %vm164_vm8, %v166_v28, %v162_v29 }
  0xa7   :  { %v169_v32 = vmul.f32 %v167_v31, %v946_v14 }
  0xa9   :  { %v170_v33 = vadd.f32 %v169_v32, %v951_v30 }
  0xab   :  { %173 = vrot.lane.b32.xlu0 %v170_v33, %s839_s3  ;;  %v171_v36 = vmul.f32 0.0, %v170_v33 }
 0x11d   :  { %v174_v34 = vpop.permute.xlu0 %173 }
 0x11e   :  { %v176_v35 = vmul.f32 %v174_v34, %v170_v33 }
 0x120   :  { %178 = vrot.lane.b32.xlu0 %v176_v35, %s840_s17 }
 0x192   :  { %v179_v37 = vpop.permute.xlu0 %178 }
 0x193   :  { %v181_v38 = vadd.f32 %v179_v37, %v171_v36 }
 0x195   :  { %765 = vtanh.f32 %v181_v38 }
 0x19b   :  { %v766_v39 = vpop.eup %765 }
 0x19c   :  { %184 = vrot.lane.b32.xlu1 %v766_v39, %s839_s3 }
 0x20e   :  { %v185_v41 = vpop.permute.xlu1 %184 }
 0x20f   :  { %v187_v42 = vmul.f32 %v185_v41, %v170_v33 }
 0x211   :  { %189 = vrot.lane.b32.xlu1 %v187_v42, %s840_s17 }
 0x283   :  { %v190_v44 = vpop.permute.xlu1 %189 }
 0x284   :  { %735 = vmatmul.msk.f32.vlgmr.msrb.gmra.mxu2 %vm124_vm9, %v190_v44 }
 0x285   :  { %595 = vmatpush.msrb.mxu2 %v890_v0  ;;  %v32_v0 = vld [vmem:[%s1099_s0 + $0x10] sm:$0xff] }
 0x286   :  { %728 = vmatmul.msk.f32.gmra.mxu0 %vm43_vm1, %v32_v0 }
 0x287   :  { %596 = vmatpush.msrb.mxu2 %v895_v1 }
 0x289   :  { %597 = vmatpush.msrb.mxu2 %v907_v4  ;;  %v1005_v4 = vpop.f32.mrf.mxu3 }
 0x28b   :  { %598 = vmatpush.msrb.mxu2 %v915_v5 }
 0x28e   :  { %729 = vmatmul.msk.f32.gmra.mxu0 %vm43_vm1, %v33_v46 }
 0x303   :  { %v95_v5 = vpop.f32.mrf.mxu0 }
 0x304   :  { %v96_v19 = vadd.f32 %v937_v9, %v95_v5  ;;  %v34_v5 = vld [vmem:[%s1099_s0 + $0x20] sm:$0xff] }
 0x305   :  { %730 = vmatmul.msk.f32.gmra.mxu0 %vm43_vm1, %v34_v5  ;;  %v108_v5 = vadd.f32 %v937_v9, %v1003_v18 }
 0x307   :  { %v210_v48 = vpop.f32.mrf.mxu2 }
 0x308   :  { %v213_v49 = vadd.f32 %v210_v48, %v93_v47 }
 0x30a   :  { %v214_v50 = vmul.f32 %v213_v49, %v946_v14 }
 0x30c   :  { %v736_v51 = vmul.f32 -1.442695, %v214_v50  ;;  %v98_v50 = vpop.f32.mrf.mxu0 }
 0x30e   :  { %767 = vpow2.f32 %v736_v51  ;;  %v99_v51 = vadd.f32 %v937_v9, %v98_v50 }
 0x314   :  { %v768_v52 = vpop.eup %767 }
 0x315   :  { %v218_v53 = vadd.f32 1.0, %v768_v52 }
 0x317   :  { %769 = vrcp.f32 %v218_v53  ;;  %v230_v57 = vand.u32 2147483648, %v218_v53  ;;  %v228_v59 = vand.u32 2147483647, %v218_v53  ;;  %vm224_vm11 = vweird.f32 %v218_v53 }
 0x319   :  { %v231_v61 = vor.u32 1.1754944e-38, %v230_v57  ;;  %vm229_vm13 = vcmp.eq.f32.partialorder %v228_v59, 8.507059e+37 }
 0x31d   :  { %v770_v54 = vpop.eup %769 }
 0x31e   :  { %v220_v55 = vmul.f32 %v770_v54, %v218_v53  ;;  %vm225_vm10 = vweird.f32 %v770_v54 }
 0x31f   :  { %vm226_vm12 = vmor %vm224_vm11, %vm225_vm10 }
 0x320   :  { %v221_v56 = vsub.f32 1.0, %v220_v55 }
 0x322   :  { %v222_v58 = vmul.f32 %v770_v54, %v221_v56 }
 0x324   :  { %v223_v60 = vadd.f32 %v770_v54, %v222_v58 }
 0x326   :  { %v227_v62 = vsel %vm226_vm12, %v770_v54, %v223_v60 }
 0x327   :  { %v232_v63 = vsel %vm229_vm13, %v231_v61, %v227_v62 }
 0x328   :  { %v234_v2 = vmul.f32 %v232_v63, %v946_v14 }
 0x32a   :  { %v235_v3 = vadd.f32 %v234_v2, %v951_v30 }
 0x32c   :  { %238 = vrot.lane.b32.xlu2 %v235_v3, %s839_s3  ;;  %v236_v8 = vmul.f32 %v235_v3, %v181_v38 }
 0x386   :  { %v239_v6 = vpop.permute.xlu2 %238 }
 0x387   :  { %v241_v7 = vmul.f32 %v239_v6, %v235_v3 }
 0x389   :  { %243 = vrot.lane.b32.xlu2 %v241_v7, %s840_s17 }
 0x3e3   :  { %v244_v10 = vpop.permute.xlu2 %243 }
 0x3e4   :  { %v246_v11 = vadd.f32 %v244_v10, %v236_v8 }
 0x3e6   :  { %771 = vtanh.f32 %v246_v11 }
 0x3ec   :  { %v772_v12 = vpop.eup %771 }
 0x3ed   :  { %249 = vrot.lane.b32.xlu0 %v772_v12, %s839_s3 }
 0x45f   :  { %v250_v16 = vpop.permute.xlu0 %249 }
 0x460   :  { %v252_v17 = vmul.f32 %v250_v16, %v235_v3 }
 0x462   :  { %254 = vrot.lane.b32.xlu1 %v252_v17, %s840_s17 }
 0x4d4   :  { %v255_v1 = vpop.permute.xlu1 %254 }
 0x4d5   :  { %737 = vmatmul.msk.f32.vlgmr.msrb.gmra.mxu3 %vm124_vm9, %v255_v1 }
 0x558   :  { %v275_v20 = vpop.f32.mrf.mxu3 }
 0x559   :  { %v278_v21 = vadd.f32 %v275_v20, %v96_v19  ;;  %v101_v20 = vpop.f32.mrf.mxu0 }
 0x55b   :  { %v279_v22 = vmul.f32 %v278_v21, %v946_v14  ;;  %v102_v21 = vadd.f32 %v937_v9, %v101_v20 }
 0x55d   :  { %v738_v23 = vmul.f32 -1.442695, %v279_v22 }
 0x55f   :  { %773 = vpow2.f32 %v738_v23 }
 0x565   :  { %v774_v24 = vpop.eup %773 }
 0x566   :  { %v283_v25 = vadd.f32 1.0, %v774_v24 }
 0x568   :  { %775 = vrcp.f32 %v283_v25  ;;  %v295_v29 = vand.u32 2147483648, %v283_v25  ;;  %v293_v32 = vand.u32 2147483647, %v283_v25  ;;  %vm289_vm15 = vweird.f32 %v283_v25 }
 0x56a   :  { %v296_v34 = vor.u32 1.1754944e-38, %v295_v29  ;;  %vm294_vm2 = vcmp.eq.f32.partialorder %v293_v32, 8.507059e+37 }
 0x56e   :  { %v776_v26 = vpop.eup %775 }
 0x56f   :  { %v285_v27 = vmul.f32 %v776_v26, %v283_v25  ;;  %vm290_vm14 = vweird.f32 %v776_v26 }
 0x570   :  { %vm291_vm0 = vmor %vm289_vm15, %vm290_vm14 }
 0x571   :  { %v286_v28 = vsub.f32 1.0, %v285_v27 }
 0x573   :  { %v287_v31 = vmul.f32 %v776_v26, %v286_v28 }
 0x575   :  { %v288_v33 = vadd.f32 %v776_v26, %v287_v31 }
 0x577   :  { %v292_v35 = vsel %vm291_vm0, %v776_v26, %v288_v33 }
 0x578   :  { %v297_v36 = vsel %vm294_vm2, %v296_v34, %v292_v35 }
 0x579   :  { %v299_v37 = vmul.f32 %v297_v36, %v946_v14 }
 0x57b   :  { %v300_v38 = vadd.f32 %v299_v37, %v951_v30 }
 0x57d   :  { %303 = vrot.lane.b32.xlu2 %v300_v38, %s839_s3  ;;  %v301_v41 = vmul.f32 %v300_v38, %v246_v11 }
 0x5d7   :  { %v304_v39 = vpop.permute.xlu2 %303 }
 0x5d8   :  { %v306_v40 = vmul.f32 %v304_v39, %v300_v38 }
 0x5da   :  { %308 = vrot.lane.b32.xlu0 %v306_v40, %s840_s17 }
 0x64c   :  { %v309_v42 = vpop.permute.xlu0 %308 }
 0x64d   :  { %v311_v43 = vadd.f32 %v309_v42, %v301_v41 }
 0x64f   :  { %777 = vtanh.f32 %v311_v43 }
 0x655   :  { %v778_v44 = vpop.eup %777 }
 0x656   :  { %314 = vrot.lane.b32.xlu1 %v778_v44, %s839_s3 }
 0x6c8   :  { %v315_v47 = vpop.permute.xlu1 %314 }
 0x6c9   :  { %v317_v48 = vmul.f32 %v315_v47, %v300_v38 }
 0x6cb   :  { %319 = vrot.lane.b32.xlu2 %v317_v48, %s840_s17 }
 0x725   :  { %v320_v49 = vpop.permute.xlu2 %319 }
 0x726   :  { %739 = vmatmul.msk.f32.vlgmr.msrb.gmra.mxu1 %vm124_vm9, %v320_v49 }
 0x7a3   :  { %v340_v52 = vpop.f32.mrf.mxu1 }
 0x7a4   :  { %v343_v53 = vadd.f32 %v340_v52, %v99_v51  ;;  %v105_v51 = vadd.f32 %v937_v9, %v976_v45 }
 0x7a6   :  { %v344_v54 = vmul.f32 %v343_v53, %v946_v14 }
 0x7a8   :  { %v740_v55 = vmul.f32 -1.442695, %v344_v54 }
 0x7aa   :  { %779 = vpow2.f32 %v740_v55 }
 0x7b0   :  { %v780_v56 = vpop.eup %779 }
 0x7b1   :  { %v348_v57 = vadd.f32 1.0, %v780_v56 }
 0x7b3   :  { %781 = vrcp.f32 %v348_v57  ;;  %v360_v61 = vand.u32 2147483648, %v348_v57  ;;  %v358_v63 = vand.u32 2147483647, %v348_v57  ;;  %vm354_vm4 = vweird.f32 %v348_v57 }
 0x7b5   :  { %v361_v3 = vor.u32 1.1754944e-38, %v360_v61  ;;  %vm359_vm6 = vcmp.eq.f32.partialorder %v358_v63, 8.507059e+37 }
 0x7b9   :  { %v782_v58 = vpop.eup %781 }
 0x7ba   :  { %v350_v59 = vmul.f32 %v782_v58, %v348_v57  ;;  %vm355_vm3 = vweird.f32 %v782_v58 }
 0x7bb   :  { %vm356_vm5 = vmor %vm354_vm4, %vm355_vm3 }
 0x7bc   :  { %v351_v60 = vsub.f32 1.0, %v350_v59 }
 0x7be   :  { %v352_v62 = vmul.f32 %v782_v58, %v351_v60 }
 0x7c0   :  { %v353_v2 = vadd.f32 %v782_v58, %v352_v62 }
 0x7c2   :  { %v357_v6 = vsel %vm356_vm5, %v782_v58, %v353_v2 }
 0x7c3   :  { %v362_v7 = vsel %vm359_vm6, %v361_v3, %v357_v6 }
 0x7c4   :  { %v364_v8 = vmul.f32 %v362_v7, %v946_v14 }
 0x7c6   :  { %v365_v10 = vadd.f32 %v364_v8, %v951_v30 }
 0x7c8   :  { %368 = vrot.lane.b32.xlu0 %v365_v10, %s839_s3  ;;  %v366_v13 = vmul.f32 %v365_v10, %v311_v43 }
 0x83a   :  { %v369_v11 = vpop.permute.xlu0 %368 }
 0x83b   :  { %v371_v12 = vmul.f32 %v369_v11, %v365_v10 }
 0x83d   :  { %373 = vrot.lane.b32.xlu1 %v371_v12, %s840_s17 }
 0x8af   :  { %v374_v15 = vpop.permute.xlu1 %373 }
 0x8b0   :  { %v376_v16 = vadd.f32 %v374_v15, %v366_v13 }
 0x8b2   :  { %783 = vtanh.f32 %v376_v16 }
 0x8b8   :  { %v784_v17 = vpop.eup %783 }
 0x8b9   :  { %379 = vrot.lane.b32.xlu2 %v784_v17, %s839_s3 }
 0x913   :  { %v380_v0 = vpop.permute.xlu2 %379 }
 0x914   :  { %v382_v1 = vmul.f32 %v380_v0, %v365_v10 }
 0x916   :  { %384 = vrot.lane.b32.xlu0 %v382_v1, %s840_s17 }
 0x988   :  { %v385_v19 = vpop.permute.xlu0 %384 }
 0x989   :  { %741 = vmatmul.msk.f32.vlgmr.msra.gmra.mxu2 %vm124_vm9, %v385_v19 }
 0xa0c   :  { %v405_v22 = vpop.f32.mrf.mxu2 }
 0xa0d   :  { %v408_v23 = vadd.f32 %v405_v22, %v102_v21 }
 0xa0f   :  { %v409_v24 = vmul.f32 %v408_v23, %v946_v14 }
 0xa11   :  { %v742_v25 = vmul.f32 -1.442695, %v409_v24 }
 0xa13   :  { %785 = vpow2.f32 %v742_v25 }
 0xa19   :  { %v786_v26 = vpop.eup %785 }
 0xa1a   :  { %v413_v27 = vadd.f32 1.0, %v786_v26 }
 0xa1c   :  { %787 = vrcp.f32 %v413_v27  ;;  %v425_v32 = vand.u32 2147483648, %v413_v27  ;;  %v423_v34 = vand.u32 2147483647, %v413_v27  ;;  %vm419_vm7 = vweird.f32 %v413_v27 }
 0xa1e   :  { %v426_v36 = vor.u32 1.1754944e-38, %v425_v32  ;;  %vm424_vm10 = vcmp.eq.f32.partialorder %v423_v34, 8.507059e+37 }
 0xa22   :  { %v788_v28 = vpop.eup %787 }
 0xa23   :  { %v415_v29 = vmul.f32 %v788_v28, %v413_v27  ;;  %vm420_vm1 = vweird.f32 %v788_v28 }
 0xa24   :  { %vm421_vm8 = vmor %vm419_vm7, %vm420_vm1  ;;  %vm683_vm7 = vcmask 130048  }
 0xa25   :  { %v416_v31 = vsub.f32 1.0, %v415_v29 }
 0xa27   :  { %v417_v33 = vmul.f32 %v788_v28, %v416_v31 }
 0xa29   :  { %v418_v35 = vadd.f32 %v788_v28, %v417_v33 }
 0xa2b   :  { %v422_v37 = vsel %vm421_vm8, %v788_v28, %v418_v35 }
 0xa2c   :  { %v427_v38 = vsel %vm424_vm10, %v426_v36, %v422_v37 }
 0xa2d   :  { %v429_v39 = vmul.f32 %v427_v38, %v946_v14 }
 0xa2f   :  { %v430_v40 = vadd.f32 %v429_v39, %v951_v30 }
 0xa31   :  { %433 = vrot.lane.b32.xlu1 %v430_v40, %s839_s3  ;;  %v431_v43 = vmul.f32 %v430_v40, %v376_v16 }
 0xaa3   :  { %v434_v41 = vpop.permute.xlu1 %433 }
 0xaa4   :  { %v436_v42 = vmul.f32 %v434_v41, %v430_v40 }
 0xaa6   :  { %438 = vrot.lane.b32.xlu2 %v436_v42, %s840_s17 }
 0xb00   :  { %v439_v44 = vpop.permute.xlu2 %438 }
 0xb01   :  { %v441_v46 = vadd.f32 %v439_v44, %v431_v43 }
 0xb03   :  { %789 = vtanh.f32 %v441_v46 }
 0xb09   :  { %v790_v47 = vpop.eup %789 }
 0xb0a   :  { %444 = vrot.lane.b32.xlu0 %v790_v47, %s839_s3  ;;  %v111_v47 = vadd.f32 %v937_v9, %v1005_v4 }
 0xb7c   :  { %v445_v48 = vpop.permute.xlu0 %444 }
 0xb7d   :  { %v447_v49 = vmul.f32 %v445_v48, %v430_v40 }
 0xb7f   :  { %449 = vrot.lane.b32.xlu1 %v447_v49, %s840_s17 }
 0xbf1   :  { %v450_v50 = vpop.permute.xlu1 %449 }
 0xbf2   :  { %743 = vmatmul.msk.f32.vlgmr.msra.gmra.mxu3 %vm124_vm9, %v450_v50 }
 0xc75   :  { %v470_v52 = vpop.f32.mrf.mxu3 }
 0xc76   :  { %v473_v53 = vadd.f32 %v470_v52, %v105_v51 }
 0xc78   :  { %v474_v54 = vmul.f32 %v473_v53, %v946_v14 }
 0xc7a   :  { %v744_v55 = vmul.f32 -1.442695, %v474_v54 }
 0xc7c   :  { %791 = vpow2.f32 %v744_v55 }
 0xc82   :  { %v792_v56 = vpop.eup %791 }
 0xc83   :  { %v478_v57 = vadd.f32 1.0, %v792_v56 }
 0xc85   :  { %793 = vrcp.f32 %v478_v57  ;;  %v490_v61 = vand.u32 2147483648, %v478_v57  ;;  %v488_v63 = vand.u32 2147483647, %v478_v57  ;;  %vm484_vm12 = vweird.f32 %v478_v57 }
 0xc87   :  { %v491_v45 = vor.u32 1.1754944e-38, %v490_v61  ;;  %vm489_vm14 = vcmp.eq.f32.partialorder %v488_v63, 8.507059e+37 }
 0xc8b   :  { %v794_v58 = vpop.eup %793 }
 0xc8c   :  { %v480_v59 = vmul.f32 %v794_v58, %v478_v57  ;;  %vm485_vm11 = vweird.f32 %v794_v58 }
 0xc8d   :  { %vm486_vm13 = vmor %vm484_vm12, %vm485_vm11 }
 0xc8e   :  { %v481_v60 = vsub.f32 1.0, %v480_v59 }
 0xc90   :  { %v482_v62 = vmul.f32 %v794_v58, %v481_v60 }
 0xc92   :  { %v483_v2 = vadd.f32 %v794_v58, %v482_v62 }
 0xc94   :  { %v487_v3 = vsel %vm486_vm13, %v794_v58, %v483_v2 }
 0xc95   :  { %v492_v6 = vsel %vm489_vm14, %v491_v45, %v487_v3 }
 0xc96   :  { %v494_v7 = vmul.f32 %v492_v6, %v946_v14 }
 0xc98   :  { %v495_v8 = vadd.f32 %v494_v7, %v951_v30 }
 0xc9a   :  { %498 = vrot.lane.b32.xlu2 %v495_v8, %s839_s3  ;;  %v496_v12 = vmul.f32 %v495_v8, %v441_v46 }
 0xcf4   :  { %v499_v10 = vpop.permute.xlu2 %498 }
 0xcf5   :  { %v501_v11 = vmul.f32 %v499_v10, %v495_v8  ;;  %v646_v10 = vld [vmem:[%s1103_s4 + $0x18] sm:$0xff] }
 0xcf6   :  { %668 = vmatpush.msrb.mxu3 %v646_v10 }
 0xcf7   :  { %503 = vrot.lane.b32.xlu0 %v501_v11, %s840_s17  ;;  %v643_v11 = vld [vmem:[%s1103_s4] sm:$0xff] }
 0xd69   :  { %v504_v13 = vpop.permute.xlu0 %503 }
 0xd6a   :  { %v506_v15 = vadd.f32 %v504_v13, %v496_v12 }
 0xd6c   :  { %795 = vtanh.f32 %v506_v15 }
 0xd72   :  { %v796_v16 = vpop.eup %795 }
 0xd73   :  { %509 = vrot.lane.b32.xlu1 %v796_v16, %s839_s3  ;;  %v678_v16 = vld [vmem:[%s1105_s6 + $0x8] sm:$0xff] }
 0xd74   :  { %701 = vmatpush.msrb.mxu1 %v678_v16 }
 0xde5   :  { %v510_v17 = vpop.permute.xlu1 %509 }
 0xde6   :  { %v512_v0 = vmul.f32 %v510_v17, %v495_v8  ;;  %v677_v17 = vld [vmem:[%s1105_s6] sm:$0xff] }
 0xde7   :  { %702 = vmatpush.msrb.mxu1 %v677_v17 }
 0xde8   :  { %514 = vrot.lane.b32.xlu2 %v512_v0, %s840_s17  ;;  %v759_v0 = vld [vmem:[%s1104_s5] ss:$0 sm:$0xff] }
 0xe42   :  { %v515_v1 = vpop.permute.xlu2 %514 }
 0xe43   :  { %745 = vmatmul.msk.f32.vlgmr.msra.gmra.mxu1 %vm124_vm9, %v515_v1 }
 0xec0   :  { %v535_v19 = vpop.f32.mrf.mxu1 }
 0xec1   :  { %v538_v20 = vadd.f32 %v535_v19, %v108_v5 }
 0xec3   :  { %v539_v21 = vmul.f32 %v538_v20, %v946_v14  ;;  %v760_v20 = vld [vmem:[%s1106_s7] ss:$0 sm:$0xff] }
 0xec5   :  { %v746_v22 = vmul.f32 -1.442695, %v539_v21 }
 0xec7   :  { %797 = vpow2.f32 %v746_v22 }
 0xecd   :  { %v798_v23 = vpop.eup %797 }
 0xece   :  { %v543_v24 = vadd.f32 1.0, %v798_v23 }
 0xed0   :  { %799 = vrcp.f32 %v543_v24  ;;  %v555_v28 = vand.u32 2147483648, %v543_v24  ;;  %v553_v31 = vand.u32 2147483647, %v543_v24  ;;  %vm549_vm0 = vweird.f32 %v543_v24 }
 0xed2   :  { %v556_v18 = vor.u32 1.1754944e-38, %v555_v28  ;;  %vm554_vm3 = vcmp.eq.f32.partialorder %v553_v31, 8.507059e+37 }
 0xed6   :  { %v800_v25 = vpop.eup %799 }
 0xed7   :  { %v545_v26 = vmul.f32 %v800_v25, %v543_v24  ;;  %vm550_vm15 = vweird.f32 %v800_v25 }
 0xed8   :  { %vm551_vm2 = vmor %vm549_vm0, %vm550_vm15 }
 0xed9   :  { %v546_v27 = vsub.f32 1.0, %v545_v26 }
 0xedb   :  { %v547_v29 = vmul.f32 %v800_v25, %v546_v27 }
 0xedd   :  { %v548_v32 = vadd.f32 %v800_v25, %v547_v29 }
 0xedf   :  { %v552_v33 = vsel %vm551_vm2, %v800_v25, %v548_v32 }
 0xee0   :  { %v557_v34 = vsel %vm554_vm3, %v556_v18, %v552_v33 }
 0xee1   :  { %v559_v35 = vmul.f32 %v557_v34, %v946_v14 }
 0xee3   :  { %v560_v36 = vadd.f32 %v559_v35, %v951_v30 }
 0xee5   :  { %563 = vrot.lane.b32.xlu0 %v560_v36, %s839_s3  ;;  %v561_v39 = vmul.f32 %v560_v36, %v506_v15 }
 0xf57   :  { %v564_v37 = vpop.permute.xlu0 %563 }
 0xf58   :  { %v566_v38 = vmul.f32 %v564_v37, %v560_v36 }
 0xf5a   :  { %568 = vrot.lane.b32.xlu1 %v566_v38, %s840_s17 }
 0xfcc   :  { %v569_v40 = vpop.permute.xlu1 %568 }
 0xfcd   :  { %v571_v41 = vadd.f32 %v569_v40, %v561_v39 }
 0xfcf   :  { %801 = vtanh.f32 %v571_v41 }
 0xfd5   :  { %v802_v42 = vpop.eup %801 }
 0xfd6   :  { %574 = vrot.lane.b32.xlu2 %v802_v42, %s839_s3 }
0x1030   :  { %v575_v43 = vpop.permute.xlu2 %574 }
0x1031   :  { %v577_v44 = vmul.f32 %v575_v43, %v560_v36 }
0x1033   :  { %579 = vrot.lane.b32.xlu0 %v577_v44, %s840_s17 }
0x10a5   :  { %v580_v46 = vpop.permute.xlu0 %579 }
0x10a6   :  { %747 = vmatmul.msk.f32.vlgmr.msrb.gmra.mxu2 %vm124_vm9, %v580_v46 }
0x1129   :  { %v600_v48 = vpop.f32.mrf.mxu2 }
0x112a   :  { %v603_v49 = vadd.f32 %v600_v48, %v111_v47 }
0x112c   :  { %v604_v50 = vmul.f32 %v603_v49, %v946_v14 }
0x112e   :  { %v748_v51 = vmul.f32 -1.442695, %v604_v50 }
0x1130   :  { %803 = vpow2.f32 %v748_v51 }
0x1136   :  { %v804_v52 = vpop.eup %803 }
0x1137   :  { %v608_v53 = vadd.f32 1.0, %v804_v52 }
0x1139   :  { %805 = vrcp.f32 %v608_v53  ;;  %v620_v57 = vand.u32 2147483648, %v608_v53  ;;  %v618_v59 = vand.u32 2147483647, %v608_v53  ;;  %vm614_vm5 = vweird.f32 %v608_v53 }
0x113b   :  { %v621_v9 = vor.u32 1.1754944e-38, %v620_v57  ;;  %vm619_vm1 = vcmp.eq.f32.partialorder %v618_v59, 8.507059e+37 }
0x113f   :  { %v806_v54 = vpop.eup %805 }
0x1140   :  { %v610_v55 = vmul.f32 %v806_v54, %v608_v53  ;;  %vm615_vm4 = vweird.f32 %v806_v54 }
0x1141   :  { %vm616_vm6 = vmor %vm614_vm5, %vm615_vm4 }
0x1142   :  { %v611_v56 = vsub.f32 1.0, %v610_v55 }
0x1144   :  { %v612_v58 = vmul.f32 %v806_v54, %v611_v56 }
0x1146   :  { %v613_v60 = vadd.f32 %v806_v54, %v612_v58 }
0x1148   :  { %v617_v4 = vsel %vm616_vm6, %v806_v54, %v613_v60 }
0x1149   :  { %v622_v61 = vsel %vm619_vm1, %v621_v9, %v617_v4 }
0x114a   :  { %v624_v62 = vmul.f32 %v622_v61, %v946_v14  ;;  %v645_v14 = vld [vmem:[%s1103_s4 + $0x10] sm:$0xff] }
0x114b   :  { %669 = vmatpush.msrb.mxu3 %v645_v14 }
0x114c   :  { %v625_v63 = vadd.f32 %v624_v62, %v951_v30  ;;  %v644_v30 = vld [vmem:[%s1103_s4 + $0x8] sm:$0xff] }
0x114d   :  { %670 = vmatpush.msrb.mxu3 %v644_v30 }
0x114e   :  { %628 = vrot.lane.b32.xlu1 %v625_v63, %s839_s3  ;;  %v626_v3 = vmul.f32 %v625_v63, %v571_v41 }
0x114f   :  { %671 = vmatpush.msrb.mxu3 %v643_v11 }
0x11c0   :  { %v629_v2 = vpop.permute.xlu1 %628 }
0x11c1   :  { %v631_v45 = vmul.f32 %v629_v2, %v625_v63 }
0x11c3   :  { %633 = vrot.lane.b32.xlu2 %v631_v45, %s840_s17 }
0x121d   :  { %v634_v6 = vpop.permute.xlu2 %633 }
0x121e   :  { %v636_v7 = vadd.f32 %v634_v6, %v626_v3 }
0x1220   :  { %807 = vtanh.f32 %v636_v7 }
0x1226   :  { %v808_v8 = vpop.eup %807 }
0x1227   :  { %639 = vrot.lane.b32.xlu0 %v808_v8, %s839_s3 }
0x1299   :  { %v640_v12 = vpop.permute.xlu0 %639 }
0x129a   :  { %v642_v13 = vmul.f32 %v640_v12, %v625_v63 }
0x129c   :  { %652 = vrot.lane.b32.xlu1 %v642_v13, %s840_s17 }
0x130e   :  { %v653_v15 = vpop.permute.xlu1 %652 }
0x130f   :  { %749 = vmatmul.msk.f32.vlgmr.msrb.gmra.mxu3 %vm124_vm9, %v653_v15  ;;  %vm707_vm9 = vcmask 9216  }
0x1392   :  { %v673_v1 = vpop.f32.mrf.mxu3 }
0x1393   :  { %v674_v5 = vadd.f32 %v759_v0, %v673_v1 }
0x1395   :  { %809 = vtanh.f32 %v674_v5 }
0x139b   :  { %v810_v19 = vpop.eup %809 }
0x139c   :  { %750 = vmatmul.msk.f32.vlgmr.msrb.gmra.mxu1 %vm683_vm7, %v810_v19 }
0x1419   :  { %v704_v21 = vpop.f32.mrf.mxu1 }
0x141a   :  { %v705_v22 = vadd.f32 %v760_v20, %v704_v21 }
0x141c   :  { %708 = vst.msk [vmem:[#allocation2] sm:$0x3] %vm707_vm9, %v705_v22 }
0x141d   :  { %719 = dma.vmem_to_hbm [thread:$0]  %s715_s22, 32, %s717_s24, [#allocation3]  }
0x141e   :  { %835 = dma.done.wait [#allocation3], 32  }
0x141f   :  { %836 = vsyncadd [#allocation3], 4294967264 }
0x1420   :  { %724 = vsyncpa [#allocation3], 1 }

</bundles_post_ra>
